<compile_context>
chip_gen: v7x
topology: tpu7x:2x2x1
jax: 0.10.0
libtpu: 0.0.40
codegen_flags: <defaults>
</compile_context>

<pallas_src>
import functools

import jax
import jax.numpy as jnp
from jax import lax
from jax.experimental import pallas as pl
from jax.experimental.pallas import tpu as pltpu

_EPS = 1e-9


# ------------------------------- Pallas kernels ------------------------------

def _uhat_kernel(x_ref, w_ref, u_ref):
    # x_ref: (C, TB, U_in) bf16 ; w_ref: (C, U_in, J*S) bf16 ; u_ref: (C, TB, J*S) bf16
    acc = lax.dot_general(
        x_ref[...], w_ref[...],
        dimension_numbers=(((2,), (1,)), ((0,), (0,))),   # batch over C, contract U_in
        preferred_element_type=jnp.float32)               # (C, TB, J*S) f32
    u_ref[...] = acc.astype(u_ref.dtype)


def _routing_iter_kernel(u_ref, v_ref, b_ref, d_ref, *, S, inv_b):
    # u_ref: (C, TB, J*S) bf16   v_ref: (TB, J*S) f32
    # b_ref: (C, J) f32 scratch (coupling logits, carried across grid steps)
    # d_ref: (C, J) f32 scratch (per-iteration b_ij delta accumulator)
    it, bt = pl.program_id(0), pl.program_id(1)
    n_bt = pl.num_programs(1)
    C, TB, JS = u_ref.shape
    J = JS // S

    @pl.when(jnp.logical_and(it == 0, bt == 0))
    def _init_b():
        b_ref[...] = jnp.zeros_like(b_ref)

    @pl.when(bt == 0)
    def _init_delta():
        d_ref[...] = jnp.zeros_like(d_ref)

    # Tiny one-hot group-selection matrices: oh_lj[l, j] = (l // S == j).
    oh_lj = (lax.broadcasted_iota(jnp.int32, (JS, J), 0) // S
             == lax.broadcasted_iota(jnp.int32, (JS, J), 1)).astype(jnp.float32)
    oh_jl = (lax.broadcasted_iota(jnp.int32, (J, JS), 1) // S
             == lax.broadcasted_iota(jnp.int32, (J, JS), 0)).astype(jnp.float32)

    u = u_ref[...]                                         # (C, TB, JS) bf16

    # c_ij = softmax(b_ij) over the num_unit axis (torch: softmax(b_ij, dim=2)).
    b = b_ref[...]                                         # (C, J)
    e = jnp.exp(b - jnp.max(b, axis=1, keepdims=True))
    c_ij = e * pl.reciprocal(jnp.sum(e, axis=1, keepdims=True), approx=True)

    # Broadcast c over unit_size via a tiny matmul: c_full[c, j*S+s] = c_ij[c, j].
    c_full = jnp.dot(c_ij, oh_jl)                          # (C, JS) f32

    # s_j: weighted sum over input capsules (f32 accumulation on the VPU).
    s = jnp.sum(c_full[:, None, :] * u, axis=0)            # (TB, JS) f32

    # squash over each unit_size group (eps-guarded, rsqrt + approx reciprocal).
    sq = jnp.dot(s * s, oh_lj)                             # (TB, J)
    scale = sq * lax.rsqrt(sq + _EPS) * pl.reciprocal(1.0 + sq, approx=True)
    v = s * jnp.dot(scale, oh_jl)                          # (TB, JS)
    v_ref[...] = v

    # Agreement <u_hat, v_j> contracted over unit_size (MXU via one-hot),
    # mean over the full batch (inv_b = 1 / B_total).
    q = jnp.sum(u * v[None, :, :], axis=1)                 # (C, JS) f32
    d_ref[...] = d_ref[...] + jnp.dot(q, oh_lj) * inv_b    # (C, J)

    @pl.when(bt == n_bt - 1)
    def _fold_b():
        b_ref[...] = b_ref[...] + d_ref[...]


def _conv_squash_kernel(w_ref, b_ref, p_ref, o_ref):
    # w_ref: (1, P, C*K*K) bf16   b_ref: (1, P, 1) f32
    # p_ref: (1, C*K*K, Ho*Wo) bf16   o_ref: (1, 1, P, Ho*Wo) f32
    y = lax.dot_general(
        w_ref[0], p_ref[0],
        dimension_numbers=(((1,), (0,)), ((), ())),
        preferred_element_type=jnp.float32) + b_ref[0]     # (P, Ho*Wo) f32

    # squash over the whole (P, Ho*Wo) block (== torch squash over dim=2 per unit)
    sq = jnp.sum(jnp.sum(y * y, axis=1, keepdims=True), axis=0, keepdims=True)  # (1, 1)
    scale = sq * lax.rsqrt(sq + _EPS) * pl.reciprocal(1.0 + sq, approx=True)
    o_ref[0, 0] = y * scale


# --------------------------------- wrappers ----------------------------------

def capsule_routing(x, weight, num_routing):
    """x: (B, in_unit, in_channel); weight: (1, in_channel, num_unit, unit_size, in_unit)."""
    B, U_in, C = x.shape
    w = weight[0]                                          # (C, J, S, U_in)
    _, J, S, _ = w.shape
    JS = J * S

    # bf16 MXU operands, lane-dense (J*S on the lane axis).
    x_cbu = jnp.transpose(x, (2, 0, 1)).astype(jnp.bfloat16)                         # (C, B, U_in)
    w_cul = jnp.transpose(w, (0, 3, 1, 2)).reshape(C, U_in, JS).astype(jnp.bfloat16)  # (C, U_in, J*S)

    TB = 8 if B % 8 == 0 else B
    n_bt = B // TB

    # --- kernel 1: u_hat producer, batch-parallel ---
    u_hat = pl.pallas_call(
        _uhat_kernel,
        grid=(n_bt,),
        in_specs=[pl.BlockSpec((C, TB, U_in), lambda bt: (0, bt, 0)),
                  pl.BlockSpec((C, U_in, JS), lambda bt: (0, 0, 0))],
        out_specs=pl.BlockSpec((C, TB, JS), lambda bt: (0, bt, 0)),
        out_shape=jax.ShapeDtypeStruct((C, B, JS), jnp.bfloat16),
        compiler_params=pltpu.CompilerParams(dimension_semantics=("parallel",)),
    )(x_cbu, w_cul)

    # --- kernel 2: routing iterations, u_hat streamed per (iter, batch tile) ---
    v = pl.pallas_call(
        functools.partial(_routing_iter_kernel, S=S, inv_b=1.0 / B),
        grid=(num_routing, n_bt),
        in_specs=[pl.BlockSpec((C, TB, JS), lambda it, bt: (0, bt, 0))],
        out_specs=pl.BlockSpec((TB, JS), lambda it, bt: (bt, 0)),
        out_shape=jax.ShapeDtypeStruct((B, JS), jnp.float32),
        scratch_shapes=[pltpu.VMEM((C, J), jnp.float32),   # b_ij
                        pltpu.VMEM((C, J), jnp.float32)],  # per-iteration delta
        compiler_params=pltpu.CompilerParams(
            dimension_semantics=("arbitrary", "arbitrary"),
            vmem_limit_bytes=32 * 1024 * 1024),
    )(u_hat)

    return v.reshape(B, J, S)[..., None]                   # (B, num_unit, unit_size, 1)


def capsule_no_routing(x, conv_w, conv_b):
    """x: (B, C, H, W) NCHW; conv_w: (num_unit, p, C, 3, 3); conv_b: (num_unit, p)."""
    B, C, H, W = x.shape
    U, P, _, KH, KW = conv_w.shape
    Ho, Wo = H - KH + 1, W - KW + 1
    HW = Ho * Wo
    CK2 = C * KH * KW

    xb = x.astype(jnp.bfloat16)
    # im2col (JAX glue) -> (B, C*K*K, Ho*Wo) bf16.
    # TODO(synk): fuse im2col into the kernel via halo-window BlockSpec + in-kernel
    #             static slices to avoid the K*K-fold HBM duplication of the input.
    cols = [xb[:, :, kh:kh + Ho, kw:kw + Wo] for kh in range(KH) for kw in range(KW)]
    patches = jnp.stack(cols, axis=2).reshape(B, CK2, HW)

    wmat = conv_w.reshape(U, P, CK2).astype(jnp.bfloat16)  # (U, P, C*K*K)
    bias = conv_b.reshape(U, P, 1).astype(jnp.float32)     # (U, P, 1)

    y = pl.pallas_call(
        _conv_squash_kernel,
        grid=(B, U),
        in_specs=[pl.BlockSpec((1, P, CK2), lambda b, u: (u, 0, 0)),
                  pl.BlockSpec((1, P, 1), lambda b, u: (u, 0, 0)),
                  pl.BlockSpec((1, CK2, HW), lambda b, u: (b, 0, 0))],
        out_specs=pl.BlockSpec((1, 1, P, HW), lambda b, u: (b, u, 0, 0)),
        out_shape=jax.ShapeDtypeStruct((B, U, P, HW), jnp.float32),
        compiler_params=pltpu.CompilerParams(
            dimension_semantics=("parallel", "parallel"),
            vmem_limit_bytes=32 * 1024 * 1024),
    )(wmat, bias, patches)

    # (B, U, P, Ho*Wo) -> (B, U, P*Ho*Wo): pure row-major regroup (torch's .view order).
    return y.reshape(B, U, P * HW)


class CapsuleLayer:
    """JAX/Pallas port of the PyTorch CapsuleLayer (forward only)."""

    def __init__(self, p, in_unit, in_channel, num_unit, unit_size,
                 use_routing, num_routing, key):
        self.p = p
        self.in_unit = in_unit
        self.in_channel = in_channel
        self.num_unit = num_unit
        self.unit_size = unit_size
        self.use_routing = use_routing
        self.num_routing = num_routing
        if use_routing:
            # torch: nn.Parameter(torch.randn(1, in_channel, num_unit, unit_size, in_unit))
            self.weight = jax.random.normal(
                key, (1, in_channel, num_unit, unit_size, in_unit), jnp.float32)
        else:
            # torch: nn.Conv2d(in_channel, p, 3, 1) per unit (kaiming-uniform-ish init)
            kw, kb = jax.random.split(key)
            fan_in = in_channel * 3 * 3
            bound = 1.0 / float(jnp.sqrt(jnp.float32(fan_in)))
            self.conv_w = jax.random.uniform(
                kw, (num_unit, p, in_channel, 3, 3), jnp.float32, -bound, bound)
            self.conv_b = jax.random.uniform(
                kb, (num_unit, p), jnp.float32, -bound, bound)

    def __call__(self, x):
        if self.use_routing:
            return capsule_routing(x, self.weight, self.num_routing)
        return capsule_no_routing(x, self.conv_w, self.conv_b)


# ------------------------------ pure-JAX references ---------------------------

def _ref_squash(s, axis):
    sq = jnp.sum(s * s, axis=axis, keepdims=True)
    return (sq / (1.0 + sq)) * s / jnp.sqrt(sq)


def _ref_routing(x, weight, num_routing):
    w = weight[0]                                          # (C, J, S, U)
    C, J, _S, _U = w.shape
    xt = jnp.transpose(x, (0, 2, 1))                       # (B, C, U)
    u_hat = jnp.einsum('cjsu,bcu->bcjs', w, xt)
    b_ij = jnp.zeros((C, J), jnp.float32)
    v_j = None
    for _ in range(num_routing):
        c_ij = jax.nn.softmax(b_ij, axis=1)
        s_j = jnp.sum(c_ij[None, :, :, None] * u_hat, axis=1)
        v_j = _ref_squash(s_j, axis=-1)
        u_vj = jnp.sum(u_hat * v_j[:, None, :, :], axis=-1)
        b_ij = b_ij + jnp.mean(u_vj, axis=0)
    return v_j[..., None]


def _ref_no_routing(x, conv_w, conv_b):
    B = x.shape[0]
    U = conv_w.shape[0]
    outs = []
    for u in range(U):
        o = lax.conv_general_dilated(
            x, conv_w[u], window_strides=(1, 1), padding='VALID',
            dimension_numbers=('NCHW', 'OIHW', 'NCHW'))
        outs.append(o + conv_b[u][None, :, None, None])
    y = jnp.stack(outs, axis=1).reshape(B, U, -1)
    return _ref_squash(y, axis=2)


# ----------------------------------- main -------------------------------------

if __name__ == "__main__":
    key = jax.random.PRNGKey(0)
    k_xr, k_wr, k_xc, k_wc = jax.random.split(key, 4)

    # --- routing branch (DigitCaps-style) ---
    batch, in_unit, in_channel, num_unit, unit_size, num_routing = 16, 8, 16, 4, 16, 3
    digit_caps = CapsuleLayer(p=0, in_unit=in_unit, in_channel=in_channel,
                              num_unit=num_unit, unit_size=unit_size,
                              use_routing=True, num_routing=num_routing, key=k_wr)
    x_r = jax.random.normal(k_xr, (batch, in_unit, in_channel), jnp.float32)
    v = jax.block_until_ready(digit_caps(x_r))
    # Reference on bf16-quantized inputs (the kernel feeds bf16 operands to the MXU,
    # all accumulations / routing state are f32).
    x_q = x_r.astype(jnp.bfloat16).astype(jnp.float32)
    w_q = digit_caps.weight.astype(jnp.bfloat16).astype(jnp.float32)
    v_ref = _ref_routing(x_q, w_q, num_routing)
    assert v.shape == (batch, num_unit, unit_size, 1), v.shape
    assert jnp.allclose(v, v_ref, atol=3e-2, rtol=3e-2), float(jnp.max(jnp.abs(v - v_ref)))

    # --- no-routing branch (PrimaryCaps-style) ---
    p, c_in, hw, n_unit, batch_c = 8, 4, 16, 4, 2
    primary_caps = CapsuleLayer(p=p, in_unit=0, in_channel=c_in, num_unit=n_unit,
                                unit_size=0, use_routing=False, num_routing=0, key=k_wc)
    x_c = jax.random.normal(k_xc, (batch_c, c_in, hw, hw), jnp.float32)
    u = jax.block_until_ready(primary_caps(x_c))
    xc_q = x_c.astype(jnp.bfloat16).astype(jnp.float32)
    wc_q = primary_caps.conv_w.astype(jnp.bfloat16).astype(jnp.float32)
    u_ref = _ref_no_routing(xc_q, wc_q, primary_caps.conv_b)
    assert u.shape == (batch_c, n_unit, p * (hw - 2) * (hw - 2)), u.shape
    assert jnp.allclose(u, u_ref, atol=1e-2, rtol=1e-2), float(jnp.max(jnp.abs(u - u_ref)))

    print("KERNEL_OK")
</pallas_src>

<mosaic_0001>
module attributes {stable_mosaic.version = 11 : i64} {
  func.func @_uhat_kernel(%arg0: i32, %arg1: memref<16x8x8xbf16, #tpu.memory_space<vmem>>, %arg2: memref<16x8x64xbf16, #tpu.memory_space<vmem>>, %arg3: memref<16x8x64xbf16, #tpu.memory_space<vmem>>) attributes {dimension_semantics = [#tpu.dimension_semantics<parallel>], iteration_bounds = array<i64: 2>, scalar_prefetch = 0 : i64, scratch_operands = 0 : i64, tpu.core_type = #tpu.core_type<tc>, window_params = [{transform_indices = @transform_0, window_bounds = array<i64: 16, 8, 8>}, {pipeline_mode = #tpu.pipeline_mode<synchronous>, transform_indices = @transform_1, window_bounds = array<i64: 16, 8, 64>}, {transform_indices = @transform_2, window_bounds = array<i64: 16, 8, 64>}]} {
    %c0 = arith.constant 0 : index
    %c0_0 = arith.constant 0 : index
    %c0_1 = arith.constant 0 : index
    %0 = vector.load %arg1[%c0, %c0_0, %c0_1] : memref<16x8x8xbf16, #tpu.memory_space<vmem>>, vector<16x8x8xbf16>
    %c0_2 = arith.constant 0 : index
    %c0_3 = arith.constant 0 : index
    %c0_4 = arith.constant 0 : index
    %1 = vector.load %arg2[%c0_2, %c0_3, %c0_4] : memref<16x8x64xbf16, #tpu.memory_space<vmem>>, vector<16x8x64xbf16>
    %cst = arith.constant dense<0.000000e+00> : vector<16x8x64xf32>
    %2 = tpu.matmul %0, %1, %cst {dimension_numbers = #tpu.dot_dimension_numbers<[2], [1], [1], [2], [0, 0, 0, 1, 1, 2], [0], [0]>} : vector<16x8x8xbf16>, vector<16x8x64xbf16>, vector<16x8x64xf32> -> vector<16x8x64xf32>
    %3 = arith.truncf %2 : vector<16x8x64xf32> to vector<16x8x64xbf16>
    %c0_5 = arith.constant 0 : index
    %c0_6 = arith.constant 0 : index
    %c0_7 = arith.constant 0 : index
    %4 = vector.load %arg3[%c0_5, %c0_6, %c0_7] : memref<16x8x64xbf16, #tpu.memory_space<vmem>>, vector<16x8x64xbf16>
    tpu.vector_store %arg3[%c0_5, %c0_6, %c0_7], %3 {strides = array<i32>} : memref<16x8x64xbf16, #tpu.memory_space<vmem>>, vector<16x8x64xbf16>,
    return
  }
  func.func @transform_0(%arg0: i32) -> (i32, i32, i32) {
    %c0_i32 = arith.constant 0 : i32
    %c0_i32_0 = arith.constant 0 : i32
    %c0_i32_1 = arith.constant 0 : i32
    return %c0_i32, %arg0, %c0_i32_0 : i32, i32, i32
  }
  func.func @transform_1(%arg0: i32) -> (i32, i32, i32) {
    %c0_i32 = arith.constant 0 : i32
    %c0_i32_0 = arith.constant 0 : i32
    %c0_i32_1 = arith.constant 0 : i32
    %c0_i32_2 = arith.constant 0 : i32
    return %c0_i32, %c0_i32_0, %c0_i32_1 : i32, i32, i32
  }
  func.func @transform_2(%arg0: i32) -> (i32, i32, i32) {
    %c0_i32 = arith.constant 0 : i32
    %c0_i32_0 = arith.constant 0 : i32
    %c0_i32_1 = arith.constant 0 : i32
    return %c0_i32, %arg0, %c0_i32_0 : i32, i32, i32
  }
}

</mosaic_0001>

<bundles_post_ra>
// kernel: tpu_custom_call.1
= control target key start
LH: loop header
LB: loop body
LE: loop exit
PB: predicated region body
PF: predicated region fallthrough
CT: control target
= control target key end

     0   :  { %7 = vsyncpa [#allocation4], 0  ;;  %s1728_s0 = inlined_call_operand.vmem [shape: bf16[16,16,8], index: 0, kind: input, shape index: {}]   ;;  %s1729_s1 = inlined_call_operand.vmem [shape: bf16[16,8,64], index: 1, kind: input, shape index: {}]   ;;  %s1730_s2 = inlined_call_operand.hbm [shape: bf16[16,16,64], index: 2, kind: output, shape index: {}]  }
   0x1   :  { %9 = vsyncpa [#allocation4 + $0x1], 0  ;;  %s1413_s9 = smov 0   ;;  %s1415_s10 = smov 0  }
   0x2   :  { %s1417_s11 = smov 0   ;;  %s1419_s12 = smov 0  }
   0x3 LB: > { %s1127_s13 = sadd.s32 4294967295, %s1390_s12   ;;  %s1128_s14 = sadd.s32 4294967294, %s1390_s12   ;;  %s1390_s12 = sphi %s1419_s12, %s1736_s12   ;;  %s1386_s11 = sphi %s1417_s11, %s1735_s11   ;;  %s1382_s10 = sphi %s1415_s10, %s1734_s10   ;;  %s1378_s9 = sphi %s1413_s9, %s1733_s9  }
   0x4   : > { %s1436_s15 = sadd.s32 1, %s1390_s12   ;;  %s22_s16 = sadd.s32 1, %s1386_s11 }
   0x5   : > { %s19_s17 = ssub.s32 %s1390_s12, %s1436_s15  ;;  %p29_p0 = scmp.ne.s32.totalorder %s1386_s11, %s1382_s10 }
   0x6   : > { %p20_p1 = scmp.eq.s32.totalorder %s19_s17, 0  ;;  %p30_p2 = scmp.eq.s32.totalorder %s1390_s12, 0 }
   0x7   : > { %p80_p3 = scmp.eq.s32.totalorder %s1127_s13, 1  ;;  %p85_p4 = scmp.ne.s32.totalorder %s1382_s10, %s1378_s9 }
   0x8   : > { %s1449_s18 = scalar_select %p20_p1, %s1386_s11, %s22_s16  }
   0x9   : > { %p31_p5 = por %p30_p2, %p29_p0  ;;  %p1451_p6 = por %p80_p3, %p29_p0 }
   0xa   : > { %p86_p7 = scmp.eq.s32.totalorder %s1128_s14, 1  ;;  %p1130_p9 = scmp.ge.s32.totalorder %s1390_s12, 2 }
   0xc   : > { %p1455_p8 = por %p86_p7, %p85_p4  ;;  %105 = sbr.rel (%p1130_p9) target bundleno = 33 (0x21), region = 20 }
  0x13   : > { %108 = sbr.rel (!%p31_p5) target bundleno = 33 (0x21), region = 24  ;;  %s110_s21 = sand.u32 (%p31_p5), 1, %s1386_s11  }
  0x14   : > { %s1132_s22 = sshll.u32 (%p31_p5), %s1390_s12, 2  ;;  %s1131_s23 = sshll.u32 (%p31_p5), %s110_s21, 6 }
  0x15   : > { %s1467_s26 = scalar_lea.vmem (%p31_p5), %s1728_s0, %s1132_s22  ;;  %s112_s27 = scalar_lea.vmem (%p31_p5), [#allocation2], %s1131_s23 }
  0x16   : > { %v130_v0 = vld [vmem:[%s1467_s26] sm:$0xf] (%p31_p5)  ;;  %v132_v1 = vld [vmem:[%s1467_s26 + $0x8] sm:$0xf] (%p31_p5)  ;;  %v134_v2 = vld [vmem:[%s1467_s26 + $0x10] sm:$0xf] (%p31_p5) }
  0x17   : > { %131 = vst [vmem:[%s112_s27] sm:$0xf] (%p31_p5), %v130_v0  ;;  %133 = vst [vmem:[%s112_s27 + $0x4] sm:$0xf] (%p31_p5), %v132_v1  ;;  %v136_v3 = vld [vmem:[%s1467_s26 + $0x18] sm:$0xf] (%p31_p5) }
  0x18   : > { %v138_v4 = vld [vmem:[%s1467_s26 + $0x20] sm:$0xf] (%p31_p5)  ;;  %135 = vst [vmem:[%s112_s27 + $0x8] sm:$0xf] (%p31_p5), %v134_v2  ;;  %137 = vst [vmem:[%s112_s27 + $0xc] sm:$0xf] (%p31_p5), %v136_v3 }
  0x19   : > { %139 = vst [vmem:[%s112_s27 + $0x10] sm:$0xf] (%p31_p5), %v138_v4  ;;  %v140_v5 = vld [vmem:[%s1467_s26 + $0x28] sm:$0xf] (%p31_p5)  ;;  %v142_v6 = vld [vmem:[%s1467_s26 + $0x30] sm:$0xf] (%p31_p5) }
  0x1a   : > { %v144_v7 = vld [vmem:[%s1467_s26 + $0x38] sm:$0xf]  ;;  %141 = vst [vmem:[%s112_s27 + $0x14] sm:$0xf] %v140_v5  ;;  %143 = vst [vmem:[%s112_s27 + $0x18] sm:$0xf] %v142_v6 }
  0x1b   : > { %145 = vst [vmem:[%s112_s27 + $0x1c] sm:$0xf] %v144_v7  ;;  %v146_v8 = vld [vmem:[%s1467_s26 + $0x40] sm:$0xf]  ;;  %v148_v9 = vld [vmem:[%s1467_s26 + $0x48] sm:$0xf] }
  0x1c   : > { %v150_v10 = vld [vmem:[%s1467_s26 + $0x50] sm:$0xf]  ;;  %147 = vst [vmem:[%s112_s27 + $0x20] sm:$0xf] %v146_v8  ;;  %149 = vst [vmem:[%s112_s27 + $0x24] sm:$0xf] %v148_v9 }
  0x1d   : > { %151 = vst [vmem:[%s112_s27 + $0x28] sm:$0xf] %v150_v10  ;;  %v152_v11 = vld [vmem:[%s1467_s26 + $0x58] sm:$0xf]  ;;  %v154_v12 = vld [vmem:[%s1467_s26 + $0x60] sm:$0xf] }
  0x1e   : > { %v156_v13 = vld [vmem:[%s1467_s26 + $0x68] sm:$0xf]  ;;  %153 = vst [vmem:[%s112_s27 + $0x2c] sm:$0xf] %v152_v11  ;;  %155 = vst [vmem:[%s112_s27 + $0x30] sm:$0xf] %v154_v12 }
  0x1f   : > { %157 = vst [vmem:[%s112_s27 + $0x34] sm:$0xf] %v156_v13  ;;  %v158_v14 = vld [vmem:[%s1467_s26 + $0x70] sm:$0xf]  ;;  %v160_v15 = vld [vmem:[%s1467_s26 + $0x78] sm:$0xf] }
  0x20   : > { %159 = vst [vmem:[%s112_s27 + $0x38] sm:$0xf] %v158_v14  ;;  %161 = vst [vmem:[%s112_s27 + $0x3c] sm:$0xf] %v160_v15 }
  0x21 PF: > { %p1133_p10 = scmp.ge.s32.totalorder %s1390_s12, 1  ;;  %p215_p11 = scmp.lt.s32.totalorder %s1390_s12, 3 }
  0x23   : > { %p216_p12 = pnand %p1133_p10, %p215_p11 }
  0x24   : > { %v260_v16 = vld [vmem:[%s1729_s1] sm:$0xf] (!%p216_p12)  ;;  %vm280_vm0 = vcmask (!%p216_p12), 1043456   ;;  %v261_v17 = vld [vmem:[%s1729_s1 + $0x4] sm:$0xf] (!%p216_p12)  ;;  %v1392_v18 = vmov (!%p216_p12), 0.0  }
  0x25   : > { %219 = sbr.rel (%p216_p12) target bundleno = 327 (0x147), region = 65  ;;  %1188 = vmatprep.subr.bf16.mxu0 (!%p216_p12), %v1392_v18  ;;  %1194 = vmatprep.subr.bf16.mxu1 (!%p216_p12), %v1392_v18  ;;  %v282_v19 = vsel (!%p216_p12), %vm280_vm0, %v260_v16, 0  ;;  %v328_v20 = vsel (!%p216_p12), %vm280_vm0, %v261_v17, 0  ;;  %s222_s4 = sand.u32 (!%p216_p12), 1, %s1382_s10   ;;  %vm276_vm1 = vcmask (!%p216_p12), 64512   ;;  %vm1393_vm2 = vmmov (!%p216_p12), 0  }
  0x26   : > { %1189 = vmatpush3.bf16.msra.mxu0 (!%p216_p12), %v282_v19  ;;  %1195 = vmatpush3.bf16.msra.mxu1 (!%p216_p12), %v328_v20  ;;  %s1500_s5 = sshll.u32 (!%p216_p12), %s222_s4, 6  ;;  %v262_v21 = vld [vmem:[%s1729_s1 + $0x8] sm:$0xf] (!%p216_p12)  ;;  %v263_v22 = vld [vmem:[%s1729_s1 + $0xc] sm:$0xf] (!%p216_p12)  ;;  %vm1030_vm3 = vcmask (!%p216_p12), 519168  }
  0x27   : > { %1190 = vmatprep.mubr.msk.bf16.mxu0 (!%p216_p12), %vm1393_vm2, %v1392_v18  ;;  %1196 = vmatprep.mubr.msk.bf16.mxu1 (!%p216_p12), %vm1393_vm2, %v1392_v18  ;;  %v374_v23 = vsel (!%p216_p12), %vm280_vm0, %v262_v21, 0  ;;  %v420_v24 = vsel (!%p216_p12), %vm280_vm0, %v263_v22, 0  ;;  %s1515_s16 = scalar_lea.vmem (!%p216_p12), [#allocation2], %s1500_s5  ;;  %v264_v27 = vld [vmem:[%s1729_s1 + $0x10] sm:$0xf] (!%p216_p12)  ;;  %s1640_s28 = scalar_lea.vmem (!%p216_p12), [#allocation3], %s1500_s5 }
  0x28   : > { %v244_v25 = vld [vmem:[%s1515_s16] sm:$0xf] (!%p216_p12)  ;;  %v245_v26 = vld [vmem:[%s1515_s16 + $0x4] sm:$0xf] (!%p216_p12)  ;;  %1200 = vmatprep.subr.bf16.mxu0 (!%p216_p12), %v1392_v18  ;;  %1206 = vmatprep.subr.bf16.mxu1 (!%p216_p12), %v1392_v18  ;;  %v265_v28 = vld [vmem:[%s1729_s1 + $0x14] sm:$0xf] (!%p216_p12) }
  0x29   : > { %1191 = vmatmul.mubr.msk.bf16.vlgmr.msra.gmra.mrb[0].mxu0 (!%p216_p12), %vm276_vm1, %v244_v25  ;;  %1197 = vmatmul.mubr.msk.bf16.vlgmr.msra.gmra.mrb[0].mxu1 (!%p216_p12), %vm276_vm1, %v245_v26  ;;  %v246_v29 = vld [vmem:[%s1515_s16 + $0x8] sm:$0xf] (!%p216_p12)  ;;  %v247_v30 = vld [vmem:[%s1515_s16 + $0xc] sm:$0xf] (!%p216_p12)  ;;  %v466_v31 = vsel (!%p216_p12), %vm280_vm0, %v264_v27, 0  ;;  %v512_v32 = vsel (!%p216_p12), %vm280_vm0, %v265_v28, 0 }
  0x2a   : > { %1201 = vmatpush3.bf16.msra.mxu0 (!%p216_p12), %v374_v23  ;;  %1207 = vmatpush3.bf16.msra.mxu1 (!%p216_p12), %v420_v24  ;;  %v266_v33 = vld [vmem:[%s1729_s1 + $0x18] sm:$0xf] (!%p216_p12)  ;;  %v267_v34 = vld [vmem:[%s1729_s1 + $0x1c] sm:$0xf] (!%p216_p12)  ;;  %v248_v35 = vld [vmem:[%s1515_s16 + $0x10] sm:$0xf] (!%p216_p12) }
  0x2b   : > { %1202 = vmatprep.mubr.msk.bf16.mxu0 (!%p216_p12), %vm1393_vm2, %v1392_v18  ;;  %1208 = vmatprep.mubr.msk.bf16.mxu1 (!%p216_p12), %vm1393_vm2, %v1392_v18  ;;  %v249_v36 = vld [vmem:[%s1515_s16 + $0x14] sm:$0xf] (!%p216_p12)  ;;  %v558_v37 = vsel (!%p216_p12), %vm280_vm0, %v266_v33, 0  ;;  %v604_v38 = vsel (!%p216_p12), %vm280_vm0, %v267_v34, 0  ;;  %v268_v39 = vld [vmem:[%s1729_s1 + $0x20] sm:$0xf] (!%p216_p12) }
  0x2c   : > { %1212 = vmatprep.subr.bf16.mxu0 %v1392_v18  ;;  %1218 = vmatprep.subr.bf16.mxu1 %v1392_v18  ;;  %v269_v40 = vld [vmem:[%s1729_s1 + $0x24] sm:$0xf]  ;;  %v250_v41 = vld [vmem:[%s1515_s16 + $0x18] sm:$0xf]  ;;  %v251_v42 = vld [vmem:[%s1515_s16 + $0x1c] sm:$0xf] }
  0x2d   : > { %v650_v43 = vsel %vm280_vm0, %v268_v39, 0  ;;  %v696_v44 = vsel %vm280_vm0, %v269_v40, 0  ;;  %v270_v45 = vld [vmem:[%s1729_s1 + $0x28] sm:$0xf]  ;;  %v271_v46 = vld [vmem:[%s1729_s1 + $0x2c] sm:$0xf] }
  0x2e   : > { %v252_v47 = vld [vmem:[%s1515_s16 + $0x20] sm:$0xf]  ;;  %v253_v48 = vld [vmem:[%s1515_s16 + $0x24] sm:$0xf]  ;;  %v742_v49 = vsel %vm280_vm0, %v270_v45, 0  ;;  %v788_v50 = vsel %vm280_vm0, %v271_v46, 0 }
  0x2f   : > { %v272_v51 = vld [vmem:[%s1729_s1 + $0x30] sm:$0xf]  ;;  %v273_v52 = vld [vmem:[%s1729_s1 + $0x34] sm:$0xf]  ;;  %v254_v53 = vld [vmem:[%s1515_s16 + $0x28] sm:$0xf] }
  0x30   : > { %v255_v54 = vld [vmem:[%s1515_s16 + $0x2c] sm:$0xf]  ;;  %v834_v55 = vsel %vm280_vm0, %v272_v51, 0  ;;  %v880_v56 = vsel %vm280_vm0, %v273_v52, 0  ;;  %v274_v57 = vld [vmem:[%s1729_s1 + $0x38] sm:$0xf] }
  0x31   : > { %1203 = vmatmul.mubr.msk.bf16.vlgmr.msra.gmra.mrb[4].mxu0 %vm276_vm1, %v246_v29  ;;  %1209 = vmatmul.mubr.msk.bf16.vlgmr.msra.gmra.mrb[4].mxu1 %vm276_vm1, %v247_v30  ;;  %v275_v58 = vld [vmem:[%s1729_s1 + $0x3c] sm:$0xf]  ;;  %v256_v59 = vld [vmem:[%s1515_s16 + $0x30] sm:$0xf]  ;;  %v257_v60 = vld [vmem:[%s1515_s16 + $0x34] sm:$0xf] }
  0x32   : > { %1213 = vmatpush3.bf16.msra.mxu0 %v466_v31  ;;  %1219 = vmatpush3.bf16.msra.mxu1 %v512_v32  ;;  %v926_v61 = vsel %vm280_vm0, %v274_v57, 0  ;;  %v972_v62 = vsel %vm280_vm0, %v275_v58, 0  ;;  %v258_v63 = vld [vmem:[%s1515_s16 + $0x38] sm:$0xf]  ;;  %v259_v0 = vld [vmem:[%s1515_s16 + $0x3c] sm:$0xf] }
  0x33   : > { %1214 = vmatprep.mubr.msk.bf16.mxu0 %vm1393_vm2, %v1392_v18  ;;  %1220 = vmatprep.mubr.msk.bf16.mxu1 %vm1393_vm2, %v1392_v18  ;;  %s1153_s5 = sshll.u32 %s1127_s13, 6  ;;  %s1060_s16 = sshll.u32 %s1640_s28, 4  ;;  %s1678_s16 = int_to_ptr.vmem [resolvable:$true] %s1060_s16 }
  0x34   : > { %1224 = vmatprep.subr.bf16.mxu0 %v1392_v18  ;;  %1230 = vmatprep.subr.bf16.mxu1 %v1392_v18  ;;  %s1676_s3 = scalar_lea.hbm %s1730_s2, %s1153_s5  ;;  %s1686_s13 = scalar_lea.sflag [#allocation4], %s222_s4 }
  0x35   : > { %s1328_s6 = scalar_lea.vmem %s1678_s16, 1024  ;;  %s1394_s7 = smov [#allocation3]  }
  0x36   : > { %p1329_p13 = scmp.ne.s32.totalorder %s1678_s16, %s1328_s6  ;;  %s1332_s8 = sshll.u32 %s1394_s7, 4  ;;  %s1333_s8 = int_to_ptr.vmem [resolvable:$false] %s1332_s8 }
  0x37   : > { %s1334_s14 = scalar_lea.vmem %s1333_s8, 2048  ;;  %p1335_p2 = scmp.lt.s32.totalorder %s1678_s16, %s1333_s8 }
  0x38   : > { %p1330_p0 = pnand %p1329_p13, %p1451_p6  ;;  %p1336_p3 = scmp.lt.s32.totalorder %s1334_s14, %s1328_s6 }
  0x39   : > { %1215 = vmatmul.mubr.msk.bf16.vlgmr.msra.gmra.mrb[8].mxu0 %vm276_vm1, %v248_v35  ;;  %1221 = vmatmul.mubr.msk.bf16.vlgmr.msra.gmra.mrb[8].mxu1 %vm276_vm1, %v249_v36 }
  0x3a   : > { %1225 = vmatpush3.bf16.msra.mxu0 %v558_v37  ;;  %1231 = vmatpush3.bf16.msra.mxu1 %v604_v38  ;;  %p1331_p1 = pneg %p1330_p0  ;;  %p1337_p4 = por %p1336_p3, %p1335_p2 }
  0x3b   : > { %1226 = vmatprep.mubr.msk.bf16.mxu0 %vm1393_vm2, %v1392_v18  ;;  %1232 = vmatprep.mubr.msk.bf16.mxu1 %vm1393_vm2, %v1392_v18 }
  0x3c   : > { %1236 = vmatprep.subr.bf16.mxu0 %v1392_v18  ;;  %1242 = vmatprep.subr.bf16.mxu1 %v1392_v18  ;;  %p1338_p5 = pnand %p1337_p4, %p1331_p1 }
  0x41   : > { %1227 = vmatmul.mubr.msk.bf16.vlgmr.msra.gmra.mrb[12].mxu0 %vm276_vm1, %v250_v41  ;;  %1233 = vmatmul.mubr.msk.bf16.vlgmr.msra.gmra.mrb[12].mxu1 %vm276_vm1, %v251_v42 }
  0x42   : > { %1237 = vmatpush3.bf16.msra.mxu0 %v650_v43  ;;  %1243 = vmatpush3.bf16.msra.mxu1 %v696_v44 }
  0x43   : > { %1238 = vmatprep.mubr.msk.bf16.mxu0 %vm1393_vm2, %v1392_v18  ;;  %1244 = vmatprep.mubr.msk.bf16.mxu1 %vm1393_vm2, %v1392_v18 }
  0x44   : > { %1248 = vmatprep.subr.bf16.mxu0 %v1392_v18  ;;  %1254 = vmatprep.subr.bf16.mxu1 %v1392_v18 }
  0x49   : > { %1239 = vmatmul.mubr.msk.bf16.vlgmr.msra.gmra.mrb[16].mxu0 %vm276_vm1, %v252_v47  ;;  %1245 = vmatmul.mubr.msk.bf16.vlgmr.msra.gmra.mrb[16].mxu1 %vm276_vm1, %v253_v48 }
  0x4a   : > { %1249 = vmatpush3.bf16.msra.mxu0 %v742_v49  ;;  %1255 = vmatpush3.bf16.msra.mxu1 %v788_v50 }
  0x4b   : > { %1250 = vmatprep.mubr.msk.bf16.mxu0 %vm1393_vm2, %v1392_v18  ;;  %1256 = vmatprep.mubr.msk.bf16.mxu1 %vm1393_vm2, %v1392_v18 }
  0x4c   : > { %1260 = vmatprep.subr.bf16.mxu0 %v1392_v18  ;;  %1266 = vmatprep.subr.bf16.mxu1 %v1392_v18 }
  0x51   : > { %1251 = vmatmul.mubr.msk.bf16.vlgmr.msra.gmra.mrb[20].mxu0 %vm276_vm1, %v254_v53  ;;  %1257 = vmatmul.mubr.msk.bf16.vlgmr.msra.gmra.mrb[20].mxu1 %vm276_vm1, %v255_v54 }
  0x52   : > { %1261 = vmatpush3.bf16.msra.mxu0 %v834_v55  ;;  %1267 = vmatpush3.bf16.msra.mxu1 %v880_v56 }
  0x53   : > { %1262 = vmatprep.mubr.msk.bf16.mxu0 %vm1393_vm2, %v1392_v18  ;;  %1268 = vmatprep.mubr.msk.bf16.mxu1 %vm1393_vm2, %v1392_v18 }
  0x54   : > { %1272 = vmatprep.subr.bf16.mxu0 %v1392_v18  ;;  %1278 = vmatprep.subr.bf16.mxu1 %v1392_v18 }
  0x59   : > { %1263 = vmatmul.mubr.msk.bf16.vlgmr.msra.gmra.mrb[24].mxu0 %vm276_vm1, %v256_v59  ;;  %1269 = vmatmul.mubr.msk.bf16.vlgmr.msra.gmra.mrb[24].mxu1 %vm276_vm1, %v257_v60 }
  0x5a   : > { %1273 = vmatpush3.bf16.msra.mxu0 %v926_v61  ;;  %1279 = vmatpush3.bf16.msra.mxu1 %v972_v62 }
  0x5b   : > { %1274 = vmatprep.mubr.msk.bf16.mxu0 %vm1393_vm2, %v1392_v18  ;;  %1280 = vmatprep.mubr.msk.bf16.mxu1 %vm1393_vm2, %v1392_v18 }
  0x61   : > { %1275 = vmatmul.mubr.msk.bf16.vlgmr.msra.gmra.mrb[28].mxu0 %vm276_vm1, %v258_v63  ;;  %1281 = vmatmul.mubr.msk.bf16.vlgmr.msra.gmra.mrb[28].mxu1 %vm276_vm1, %v259_v0 }
  0xfc   : > { %v318_v1 = vpop.f32.mrb[0].mxu0  ;;  %v364_v2 = vpop.f32.mrb[0].mxu1 }
  0xfd   : > { %v1014_v3 = vpack.c.bf16 %v318_v1, %v318_v1  ;;  %v1015_v4 = vpack.c.bf16 %v364_v2, %v364_v2  ;;  %v1192_v5 = vpop.f32.mrb[1].mxu0  ;;  %v1198_v6 = vpop.f32.mrb[1].mxu1 }
  0xfe   : > { %v321_v7 = vpop.f32.mrb[2].mxu0  ;;  %v367_v8 = vpop.f32.mrb[2].mxu1 }
  0xff   : > { %1031 = vst.msk [vmem:[%s1640_s28] sm:$0xf] %vm1030_vm3, %v1014_v3  ;;  %1032 = vst.msk [vmem:[%s1640_s28 + $0x4] sm:$0xf] %vm1030_vm3, %v1015_v4  ;;  %v1193_v9 = vpop.f32.mrb[3].mxu0  ;;  %v1199_v10 = vpop.f32.mrb[3].mxu1 }
 0x104   : > { %v410_v11 = vpop.f32.mrb[4].mxu0  ;;  %v456_v12 = vpop.f32.mrb[4].mxu1 }
 0x105   : > { %v1016_v13 = vpack.c.bf16 %v410_v11, %v410_v11  ;;  %v1017_v14 = vpack.c.bf16 %v456_v12, %v456_v12  ;;  %v1204_v15 = vpop.f32.mrb[5].mxu0  ;;  %v1210_v16 = vpop.f32.mrb[5].mxu1 }
 0x106   : > { %v413_v17 = vpop.f32.mrb[6].mxu0  ;;  %v459_v18 = vpop.f32.mrb[6].mxu1 }
 0x107   : > { %1033 = vst.msk [vmem:[%s1640_s28 + $0x8] sm:$0xf] %vm1030_vm3, %v1016_v13  ;;  %1034 = vst.msk [vmem:[%s1640_s28 + $0xc] sm:$0xf] %vm1030_vm3, %v1017_v14  ;;  %v1205_v19 = vpop.f32.mrb[7].mxu0  ;;  %v1211_v20 = vpop.f32.mrb[7].mxu1 }
 0x10c   : > { %v502_v21 = vpop.f32.mrb[8].mxu0  ;;  %v548_v22 = vpop.f32.mrb[8].mxu1 }
 0x10d   : > { %v1018_v23 = vpack.c.bf16 %v502_v21, %v502_v21  ;;  %v1019_v24 = vpack.c.bf16 %v548_v22, %v548_v22  ;;  %v1216_v25 = vpop.f32.mrb[9].mxu0  ;;  %v1222_v26 = vpop.f32.mrb[9].mxu1 }
 0x10e   : > { %v505_v27 = vpop.f32.mrb[10].mxu0  ;;  %v551_v28 = vpop.f32.mrb[10].mxu1 }
 0x10f   : > { %1035 = vst.msk [vmem:[%s1640_s28 + $0x10] sm:$0xf] %vm1030_vm3, %v1018_v23  ;;  %1036 = vst.msk [vmem:[%s1640_s28 + $0x14] sm:$0xf] %vm1030_vm3, %v1019_v24  ;;  %v1217_v29 = vpop.f32.mrb[11].mxu0  ;;  %v1223_v30 = vpop.f32.mrb[11].mxu1 }
 0x114   : > { %v594_v31 = vpop.f32.mrb[12].mxu0  ;;  %v640_v32 = vpop.f32.mrb[12].mxu1 }
 0x115   : > { %v1020_v33 = vpack.c.bf16 %v594_v31, %v594_v31  ;;  %v1021_v34 = vpack.c.bf16 %v640_v32, %v640_v32  ;;  %v1228_v35 = vpop.f32.mrb[13].mxu0  ;;  %v1234_v36 = vpop.f32.mrb[13].mxu1 }
 0x116   : > { %v597_v37 = vpop.f32.mrb[14].mxu0  ;;  %v643_v38 = vpop.f32.mrb[14].mxu1 }
 0x117   : > { %1037 = vst.msk [vmem:[%s1640_s28 + $0x18] sm:$0xf] %vm1030_vm3, %v1020_v33  ;;  %1038 = vst.msk [vmem:[%s1640_s28 + $0x1c] sm:$0xf] %vm1030_vm3, %v1021_v34  ;;  %v1229_v39 = vpop.f32.mrb[15].mxu0  ;;  %v1235_v40 = vpop.f32.mrb[15].mxu1 }
 0x11c   : > { %v686_v41 = vpop.f32.mrb[16].mxu0  ;;  %v732_v42 = vpop.f32.mrb[16].mxu1 }
 0x11d   : > { %v1022_v43 = vpack.c.bf16 %v686_v41, %v686_v41  ;;  %v1023_v44 = vpack.c.bf16 %v732_v42, %v732_v42  ;;  %v1240_v45 = vpop.f32.mrb[17].mxu0  ;;  %v1246_v46 = vpop.f32.mrb[17].mxu1 }
 0x11e   : > { %v689_v47 = vpop.f32.mrb[18].mxu0  ;;  %v735_v48 = vpop.f32.mrb[18].mxu1 }
 0x11f   : > { %1039 = vst.msk [vmem:[%s1640_s28 + $0x20] sm:$0xf] %vm1030_vm3, %v1022_v43  ;;  %1040 = vst.msk [vmem:[%s1640_s28 + $0x24] sm:$0xf] %vm1030_vm3, %v1023_v44  ;;  %v1241_v49 = vpop.f32.mrb[19].mxu0  ;;  %v1247_v50 = vpop.f32.mrb[19].mxu1 }
 0x124   : > { %v778_v51 = vpop.f32.mrb[20].mxu0  ;;  %v824_v52 = vpop.f32.mrb[20].mxu1 }
 0x125   : > { %v1024_v53 = vpack.c.bf16 %v778_v51, %v778_v51  ;;  %v1025_v54 = vpack.c.bf16 %v824_v52, %v824_v52  ;;  %v1252_v55 = vpop.f32.mrb[21].mxu0  ;;  %v1258_v56 = vpop.f32.mrb[21].mxu1 }
 0x126   : > { %v781_v57 = vpop.f32.mrb[22].mxu0  ;;  %v827_v58 = vpop.f32.mrb[22].mxu1 }
 0x127   : > { %1041 = vst.msk [vmem:[%s1640_s28 + $0x28] sm:$0xf] %vm1030_vm3, %v1024_v53  ;;  %1042 = vst.msk [vmem:[%s1640_s28 + $0x2c] sm:$0xf] %vm1030_vm3, %v1025_v54  ;;  %v1253_v59 = vpop.f32.mrb[23].mxu0  ;;  %v1259_v60 = vpop.f32.mrb[23].mxu1 }
 0x12c   : > { %v870_v61 = vpop.f32.mrb[24].mxu0  ;;  %v916_v62 = vpop.f32.mrb[24].mxu1 }
 0x12d   : > { %v1026_v63 = vpack.c.bf16 %v870_v61, %v870_v61  ;;  %v1027_v0 = vpack.c.bf16 %v916_v62, %v916_v62  ;;  %v1264_v1 = vpop.f32.mrb[25].mxu0  ;;  %v1270_v2 = vpop.f32.mrb[25].mxu1 }
 0x12e   : > { %v873_v3 = vpop.f32.mrb[26].mxu0  ;;  %v919_v4 = vpop.f32.mrb[26].mxu1 }
 0x12f   : > { %1043 = vst.msk [vmem:[%s1640_s28 + $0x30] sm:$0xf] %vm1030_vm3, %v1026_v63  ;;  %1044 = vst.msk [vmem:[%s1640_s28 + $0x34] sm:$0xf] %vm1030_vm3, %v1027_v0  ;;  %v1265_v5 = vpop.f32.mrb[27].mxu0  ;;  %v1271_v6 = vpop.f32.mrb[27].mxu1 }
 0x134   : > { %v962_v7 = vpop.f32.mrb[28].mxu0  ;;  %v1008_v8 = vpop.f32.mrb[28].mxu1 }
 0x135   : > { %v1028_v9 = vpack.c.bf16 %v962_v7, %v962_v7  ;;  %v1029_v10 = vpack.c.bf16 %v1008_v8, %v1008_v8  ;;  %v1276_v11 = vpop.f32.mrb[29].mxu0  ;;  %v1282_v12 = vpop.f32.mrb[29].mxu1 }
 0x136   : > { %v965_v13 = vpop.f32.mrb[30].mxu0  ;;  %v1011_v14 = vpop.f32.mrb[30].mxu1 }
 0x137   : > { %1045 = vst.msk [vmem:[%s1640_s28 + $0x38] sm:$0xf] %vm1030_vm3, %v1028_v9  ;;  %1046 = vst.msk [vmem:[%s1640_s28 + $0x3c] sm:$0xf] %vm1030_vm3, %v1029_v10  ;;  %v1277_v15 = vpop.f32.mrb[31].mxu0  ;;  %v1283_v16 = vpop.f32.mrb[31].mxu1 }
 0x138   : > { %1341 = shalt.err (!%p1338_p5)
}
 0x139   : > { %s1342_s4 = scalar_lea.hbm %s1676_s3, 1024  ;;  %s1346_s22 = scalar_lea.hbm %s1730_s2, 2048 }
 0x13a   : > { %p1343_p7 = scmp.ne.s32.totalorder %s1676_s3, %s1342_s4  ;;  %p1347_p12 = scmp.lt.u32.totalorder %s1676_s3, %s1730_s2 }
 0x13b   : > { %p1348_p13 = scmp.lt.u32.totalorder %s1346_s22, %s1342_s4  ;;  %p1350_p1 = scmp.lt.u32.totalorder %s1342_s4, %s1676_s3 }
 0x13c   : > { %p1344_p10 = pnand %p1343_p7, %p1451_p6 }
 0x13d   : > { %p1349_p0 = por %p1348_p13, %p1347_p12 }
 0x13e   : > { %p1345_p11 = pneg %p1344_p10 }
 0x13f   : > { %p1351_p2 = por %p1350_p1, %p1349_p0 }
 0x141   : > { %p1352_p3 = pnand %p1351_p2, %p1345_p11 }
 0x143   : > { %1355 = shalt.err (!%p1352_p3)
}
 0x144   : > { %s1395_s25 = smov 64   ;;  %s1396_s26 = smov 128  }
 0x145   : > { %s1397_s27 = smov 4  }
 0x146   : > { %1284 = dma.vmem_to_hbm [thread:$0]  (%p1451_p6), %s1678_s16, 1024, %s1676_s3, %s1686_s13, %s1395_s25, %s1396_s26, %s1397_s27  }
 0x147 PF: > { %s1075_s28 = sand.u32 1, %s1378_s9   ;;  %p1287_p4 = pnand %p1130_p9, %p1455_p8 }
 0x148   : > { %s1076_s5 = scalar_lea.sflag [#allocation4], %s1075_s28 }
 0x149   : > { %1373 = dma.done.wait (!%p1287_p4), %s1076_s5, 1024  }
 0x14a   : > { %1375 = vsyncadd (!%p1287_p4), %s1076_s5, 4294966272  ;;  %p12_p5 = scmp.ge.s32.totalorder %s1436_s15, 4   ;;  %s1733_s9 = smov %s1382_s10 }
 0x14b   : > { %s1734_s10 = smov %s1386_s11  ;;  %s1735_s11 = smov %s1449_s18 }
 0x14c   : > { %s1736_s12 = smov %s1436_s15  ;;  %14 = sbr.rel (!%p12_p5) target bundleno = 3 (0x3), region = 109 }
 0x153   :  { %1081 = vsyncpa [#allocation4], 1 }
 0x154   :  { %1083 = vsyncpa [#allocation4 + $0x1], 1 }

</bundles_post_ra>
